<compile_context>
chip_gen: v6e
topology: v6e:2x2x1
jax: 0.10.0
libtpu: 0.0.40
codegen_flags: <defaults>
</compile_context>

<pallas_src>
import jax
import jax.numpy as jnp
from jax.experimental import pallas as pl
from jax.experimental.pallas import tpu as pltpu

EPS = 1e-5


def _adain_kernel(x_ref, ss_ref, o_ref):
    # x_ref : (NB, Ct, HW)  native-NCHW tile, spatial on the lane axis.
    # ss_ref: (NB, Ct, 2)   packed per-(n,c) [scale = 1 + gamma, shift = beta].
    inv_hw = 1.0 / x_ref.shape[-1]

    # Pass 1: one-pass per-(n,c) statistics in f32 (lane-axis reductions).
    x = x_ref[...].astype(jnp.float32)                       # (NB, Ct, HW)
    mean = jnp.sum(x, axis=-1, keepdims=True) * inv_hw       # (NB, Ct, 1)
    mean_sq = jnp.sum(x * x, axis=-1, keepdims=True) * inv_hw
    var = jnp.maximum(mean_sq - mean * mean, 0.0)             # biased variance
    rstd = jax.lax.rsqrt(var + EPS)                           # (NB, Ct, 1)

    # Fold affine + normalization into a single per-element FMA.
    ss = ss_ref[...].astype(jnp.float32)                      # (NB, Ct, 2)
    a = ss[:, :, 0:1] * rstd                                  # (1+gamma)*rstd
    b = ss[:, :, 1:2] - mean * a                              # beta - mean*a

    # Pass 2: epilogue.  Re-read x_ref so for bf16/fp16 inputs the f32 upcast
    # is fused per-vreg instead of materializing a full f32 copy of the block.
    o_ref[...] = (x_ref[...].astype(jnp.float32) * a + b).astype(o_ref.dtype)


def _device_profile():
    """Return (target_block_bytes, vmem_capacity_bytes, multi_core)."""
    kind = ""
    try:
        kind = jax.devices()[0].device_kind.lower()
    except Exception:
        pass
    vmem_bytes = None
    try:
        vmem_bytes = int(pltpu.get_tpu_info().vmem_capacity_bytes)
    except Exception:
        pass
    if "v7" in kind:
        target, default_vmem, multi_core = 6 << 20, 64 << 20, True    # ~3.2 TB/s
    elif "v6" in kind:
        target, default_vmem, multi_core = 4 << 20, 128 << 20, False  # ~1.4 TB/s
    elif "v5" in kind:
        target, default_vmem, multi_core = 2 << 20, 128 << 20, False  # ~0.82 TB/s
    else:
        target, default_vmem, multi_core = 2 << 20, 64 << 20, False   # conservative
    if vmem_bytes is None:
        vmem_bytes = default_vmem
    # Hard ceiling: 2x double-buffered (x + out) blocks ~= 4*block must leave
    # ample headroom inside physical VMEM (the v6e->v7x 64 MiB trap).
    target = min(target, vmem_bytes // 8)
    return target, vmem_bytes, multi_core


def _choose_c_tile(C, HW, itemsize, target_bytes):
    """Largest divisor of C, aligned to the dtype's sublane packing, that fits."""
    pack = {4: 8, 2: 16, 1: 32}.get(itemsize, 8)
    row_bytes = HW * itemsize
    for align in (pack, 8):
        if C % align != 0:
            continue
        cands = [d for d in range(align, C + 1, align) if C % d == 0]
        fit = [d for d in cands if d * row_bytes <= target_bytes]
        return max(fit) if fit else min(cands)
    # C has no legal split (block_shape dim must be a multiple of 8 or the full
    # dim): fall back to the whole channel axis.
    # TODO(synk): if C % 8 != 0 AND C*HW*itemsize exceeds the VMEM budget, the
    # spatial axis would need splitting with two-pass statistics.
    return C


def _choose_tiles(N, C, HW, itemsize, target_bytes, multi_core):
    c_tile = _choose_c_tile(C, HW, itemsize, target_bytes)
    # Sample packing: grow NB while a block stays within the target
    # (amortizes the ~0.35 us per-grid-step pipeline overhead).
    nb = 1
    while (nb * 2 <= N and N % (nb * 2) == 0
           and nb * 2 * c_tile * HW * itemsize <= target_bytes):
        nb *= 2
    if multi_core:
        # v7x: make sure a "parallel" axis has >= 2 steps so both TensorCores
        # (and their HBM bandwidth) are used.  Prefer splitting the N axis.
        while (N // nb) * (C // c_tile) < 2 and nb > 1:
            nb //= 2
        if (N // nb) * (C // c_tile) < 2:
            smaller = [d for d in range(8, c_tile, 8) if C % d == 0]
            if smaller:
                c_tile = max(smaller)
    return nb, c_tile


def adain(x_nchw, s, w_fc, b_fc):
    """x_nchw: (N, C, H, W); s: (N, S); w_fc: (2C, S); b_fc: (2C,)."""
    N, C, H, W = x_nchw.shape
    HW = H * W
    itemsize = x_nchw.dtype.itemsize

    # Native layout; free contiguous collapse of the last two dims.
    # NOTE: HW that is a multiple of 128 gives unmasked lane-dense stores; pad
    # odd spatial sizes (14x14, 7x7, ...) upstream if they matter.
    x = x_nchw.reshape(N, C, HW)

    # Hoisted style FC (one batched matmul in plain XLA), with the "+1" and
    # bias folded, packed into a single (N, C, 2) scale/shift array so the
    # kernel issues one small DMA per step instead of two.
    h = (s @ w_fc.T + b_fc).astype(jnp.float32)               # (N, 2C)
    scale_shift = jnp.stack([1.0 + h[:, :C], h[:, C:]], axis=-1)   # (N, C, 2)

    target_bytes, vmem_bytes, multi_core = _device_profile()
    nb, c_tile = _choose_tiles(N, C, HW, itemsize, target_bytes, multi_core)
    grid = (N // nb, C // c_tile)

    block_bytes = nb * c_tile * HW * itemsize
    # 2x double-buffered input + output blocks plus headroom; never above the
    # chip's physical VMEM (v5e's 16 MiB scoped default is far too small).
    vmem_limit = int(min(vmem_bytes, max(32 << 20, 4 * block_bytes + (8 << 20))))

    cost = pl.CostEstimate(
        flops=int(4 * N * C * HW),                 # sum, sumsq, FMA epilogue
        transcendentals=int(N * C),                # rsqrt per (n, c)
        bytes_accessed=int(2 * N * C * HW * itemsize + N * C * 2 * 4),
    )

    out = pl.pallas_call(
        _adain_kernel,
        out_shape=jax.ShapeDtypeStruct((N, C, HW), x.dtype),
        grid_spec=pltpu.PrefetchScalarGridSpec(
            num_scalar_prefetch=0,
            grid=grid,
            in_specs=[
                pl.BlockSpec((nb, c_tile, HW), lambda n, c: (n, c, 0)),  # x
                pl.BlockSpec((nb, c_tile, 2), lambda n, c: (n, c, 0)),   # scale/shift
            ],
            out_specs=pl.BlockSpec((nb, c_tile, HW), lambda n, c: (n, c, 0)),
        ),
        compiler_params=pltpu.CompilerParams(
            dimension_semantics=("parallel", "parallel"),
            vmem_limit_bytes=vmem_limit),
        cost_estimate=cost,
    )(x, scale_shift)

    return out.reshape(N, C, H, W)


def _adain_reference(x, s, w_fc, b_fc):
    # Pure-JAX reference mirroring the PyTorch forward.
    h = s @ w_fc.T + b_fc                      # (N, 2C)
    C = x.shape[1]
    gamma = h[:, :C][:, :, None, None]
    beta = h[:, C:][:, :, None, None]
    mean = jnp.mean(x, axis=(2, 3), keepdims=True)
    var = jnp.mean((x - mean) ** 2, axis=(2, 3), keepdims=True)
    x_norm = (x - mean) / jnp.sqrt(var + EPS)
    return (1.0 + gamma) * x_norm + beta


if __name__ == "__main__":
    key = jax.random.PRNGKey(0)
    k_x, k_s, k_w, k_b = jax.random.split(key, 4)

    N, C, H, W = 2, 8, 16, 16
    style_dim = 16

    x = jax.random.normal(k_x, (N, C, H, W), dtype=jnp.float32)
    s = jax.random.normal(k_s, (N, style_dim), dtype=jnp.float32)
    # Deterministic synthetic fc parameters (shapes from nn.Linear(style_dim, 2*C)).
    w_fc = jax.random.normal(k_w, (2 * C, style_dim), dtype=jnp.float32) * 0.1
    b_fc = jax.random.normal(k_b, (2 * C,), dtype=jnp.float32) * 0.1

    out = adain(x, s, w_fc, b_fc)
    out = jax.block_until_ready(out)

    ref = _adain_reference(x, s, w_fc, b_fc)
    assert out.shape == (N, C, H, W)
    assert jnp.allclose(out, ref, atol=1e-4, rtol=1e-4), "mismatch vs reference"

    print("KERNEL_OK")
</pallas_src>

<mosaic_0001>
module attributes {stable_mosaic.version = 11 : i64} {
  func.func @_adain_kernel(%arg0: i32, %arg1: i32, %arg2: memref<2x8x256xf32, #tpu.memory_space<vmem>>, %arg3: memref<2x8x2xf32, #tpu.memory_space<vmem>>, %arg4: memref<2x8x256xf32, #tpu.memory_space<vmem>>) attributes {dimension_semantics = [#tpu.dimension_semantics<parallel>, #tpu.dimension_semantics<parallel>], iteration_bounds = array<i64: 1, 1>, scalar_prefetch = 0 : i64, scratch_operands = 0 : i64, tpu.core_type = #tpu.core_type<tc>, window_params = [{transform_indices = @transform_0, window_bounds = array<i64: 2, 8, 256>}, {transform_indices = @transform_1, window_bounds = array<i64: 2, 8, 2>}, {transform_indices = @transform_2, window_bounds = array<i64: 2, 8, 256>}]} {
    %c0 = arith.constant 0 : index
    %c0_0 = arith.constant 0 : index
    %c0_1 = arith.constant 0 : index
    %0 = vector.load %arg2[%c0, %c0_0, %c0_1] : memref<2x8x256xf32, #tpu.memory_space<vmem>>, vector<2x8x256xf32>
    %cst = arith.constant dense<0.000000e+00> : vector<2x8xf32>
    %1 = vector.multi_reduction <add>, %0, %cst [2] : vector<2x8x256xf32> to vector<2x8xf32>
    %2 = vector.shape_cast %1 : vector<2x8xf32> to vector<2x8x1xf32>
    %cst_2 = arith.constant 3.906250e-03 : f32
    %3 = vector.broadcast %cst_2 : f32 to vector<2x8x1xf32>
    %4 = arith.mulf %2, %3 : vector<2x8x1xf32>
    %5 = arith.mulf %0, %0 : vector<2x8x256xf32>
    %cst_3 = arith.constant dense<0.000000e+00> : vector<2x8xf32>
    %6 = vector.multi_reduction <add>, %5, %cst_3 [2] : vector<2x8x256xf32> to vector<2x8xf32>
    %7 = vector.shape_cast %6 : vector<2x8xf32> to vector<2x8x1xf32>
    %cst_4 = arith.constant 3.906250e-03 : f32
    %8 = vector.broadcast %cst_4 : f32 to vector<2x8x1xf32>
    %9 = arith.mulf %7, %8 : vector<2x8x1xf32>
    %10 = arith.mulf %4, %4 : vector<2x8x1xf32>
    %11 = arith.subf %9, %10 : vector<2x8x1xf32>
    %cst_5 = arith.constant 0.000000e+00 : f32
    %12 = vector.broadcast %cst_5 : f32 to vector<2x8x1xf32>
    %13 = arith.maximumf %11, %12 : vector<2x8x1xf32>
    %cst_6 = arith.constant 9.99999974E-6 : f32
    %14 = vector.broadcast %cst_6 : f32 to vector<2x8x1xf32>
    %15 = arith.addf %13, %14 : vector<2x8x1xf32>
    %16 = math.rsqrt %15 : vector<2x8x1xf32>
    %c0_7 = arith.constant 0 : index
    %c0_8 = arith.constant 0 : index
    %c0_9 = arith.constant 0 : index
    %17 = vector.load %arg3[%c0_7, %c0_8, %c0_9] : memref<2x8x2xf32, #tpu.memory_space<vmem>>, vector<2x8x2xf32>
    %18 = vector.extract_strided_slice %17 {offsets = [0, 0, 0], sizes = [2, 8, 1], strides = [1, 1, 1]} : vector<2x8x2xf32> to vector<2x8x1xf32>
    %19 = arith.mulf %18, %16 : vector<2x8x1xf32>
    %20 = vector.extract_strided_slice %17 {offsets = [0, 0, 1], sizes = [2, 8, 1], strides = [1, 1, 1]} : vector<2x8x2xf32> to vector<2x8x1xf32>
    %21 = arith.mulf %4, %19 : vector<2x8x1xf32>
    %22 = arith.subf %20, %21 : vector<2x8x1xf32>
    %c0_10 = arith.constant 0 : index
    %c0_11 = arith.constant 0 : index
    %c0_12 = arith.constant 0 : index
    %23 = vector.load %arg2[%c0_10, %c0_11, %c0_12] : memref<2x8x256xf32, #tpu.memory_space<vmem>>, vector<2x8x256xf32>
    %24 = vector.broadcast %19 : vector<2x8x1xf32> to vector<2x8x256xf32>
    %25 = arith.mulf %23, %24 : vector<2x8x256xf32>
    %26 = vector.broadcast %22 : vector<2x8x1xf32> to vector<2x8x256xf32>
    %27 = arith.addf %25, %26 : vector<2x8x256xf32>
    %c0_13 = arith.constant 0 : index
    %c0_14 = arith.constant 0 : index
    %c0_15 = arith.constant 0 : index
    %28 = vector.load %arg4[%c0_13, %c0_14, %c0_15] : memref<2x8x256xf32, #tpu.memory_space<vmem>>, vector<2x8x256xf32>
    tpu.vector_store %arg4[%c0_13, %c0_14, %c0_15], %27 {strides = array<i32>} : memref<2x8x256xf32, #tpu.memory_space<vmem>>, vector<2x8x256xf32>,
    return
  }
  func.func @transform_0(%arg0: i32, %arg1: i32) -> (i32, i32, i32) {
    %c0_i32 = arith.constant 0 : i32
    %c0_i32_0 = arith.constant 0 : i32
    return %arg0, %arg1, %c0_i32 : i32, i32, i32
  }
  func.func @transform_1(%arg0: i32, %arg1: i32) -> (i32, i32, i32) {
    %c0_i32 = arith.constant 0 : i32
    %c0_i32_0 = arith.constant 0 : i32
    return %arg0, %arg1, %c0_i32 : i32, i32, i32
  }
  func.func @transform_2(%arg0: i32, %arg1: i32) -> (i32, i32, i32) {
    %c0_i32 = arith.constant 0 : i32
    %c0_i32_0 = arith.constant 0 : i32
    return %arg0, %arg1, %c0_i32 : i32, i32, i32
  }
}

</mosaic_0001>

<bundles_post_ra>
// kernel: tpu_custom_call.1
= control target key start
LH: loop header
LB: loop body
LE: loop exit
PB: predicated region body
PF: predicated region fallthrough
CT: control target
= control target key end

     0   :  { %7 = vsyncpa [#allocation3], 0  ;;  %s229_s0 = inlined_call_operand.hbm [shape: f32[2,8,256], index: 0, kind: input, shape index: {}]   ;;  %s230_s1 = inlined_call_operand.vmem [shape: f32[2,8,2], index: 1, kind: input, shape index: {}]   ;;  %s231_s2 = inlined_call_operand.hbm [shape: f32[2,8,256], index: 2, kind: output, shape index: {}]  }
   0x1   :  { %8 = vsyncpa [#allocation4], 0  ;;  %s183_s9 = smov [#allocation2]  }
   0x2   :  { %s14_s10 = sshll.u32 %s183_s9, 4  ;;  %s15_s10 = int_to_ptr.vmem [resolvable:$true] %s14_s10 }
   0x3   :  { %s147_s11 = scalar_lea.vmem %s15_s10, 512  ;;  %p152_p1 = scmp.lt.s32.totalorder %s15_s10, %s15_s10 }
   0x4   :  { %p148_p0 = scmp.ne.s32.totalorder %s15_s10, %s147_s11  ;;  %p153_p2 = scmp.lt.s32.totalorder %s147_s11, %s147_s11 }
   0x6   :  { %p154_p3 = por %p153_p2, %p152_p1 }
   0x8   :  { %p155_p4 = pnand %p154_p3, %p148_p0 }
   0xa   :  { %158 = shalt.err (!%p155_p4)
}
   0xb   :  { %s184_s12 = smov 256   ;;  %s185_s13 = smov 16  }
   0xc   :  { %20 = dma.hbm_to_vmem [thread:$0]  %s229_s0, 512, %s15_s10, [#allocation3], %s184_s12, %s184_s12, %s185_s13  }
   0xd   :  { %179 = dma.done.wait [#allocation3], 512  }
   0xe   :  { %180 = vsyncadd [#allocation3], 4294966784  ;;  %v26_v0 = vld [vmem:[#allocation2] sm:$0xff]  ;;  %v27_v1 = vld [vmem:[#allocation2 + $0x8] sm:$0xff]  ;;  %v186_v12 = vmov 0   ;;  %v187_v29 = vmov 1  }
   0xf   :  { %v211_v2 = vld [vmem:[#allocation2 + $0x10] sm:$0xff]  ;;  %v30_v3 = vadd.f32 %v27_v1, %v26_v0  ;;  %v38_v4 = vmul.f32 %v26_v0, %v26_v0  ;;  %v39_v5 = vmul.f32 %v27_v1, %v27_v1  ;;  %v29_v6 = vld [vmem:[#allocation2 + $0x18] sm:$0xff]  ;;  %132 = vset.pattern.permute.xlu1 %v186_v12  ;;  %133 = vset.pattern.permute.xlu0 %v187_v29  ;;  %v60_v30 = vld [vmem:[%s230_s1] sm:$0xff]  ;;  %s188_s19 = smov 1  }
  0x10   :  { %v40_v7 = vmul.f32 %v211_v2, %v211_v2  ;;  %v41_v8 = vmul.f32 %v29_v6, %v29_v6  ;;  %v33_v10 = vadd.f32 %v29_v6, %v211_v2  ;;  %v61_v33 = vld [vmem:[%s230_s1 + $0x8] sm:$0xff]  ;;  %s189_s1 = smov [#allocation5]  }
  0x11   :  { %31 = vadd.xlane.f32.xlu0 %v30_v3  ;;  %v42_v9 = vadd.f32 %v39_v5, %v38_v4  ;;  %s113_s20 = sshll.u32 %s189_s1, 4  ;;  %s114_s20 = int_to_ptr.vmem [resolvable:$true] %s113_s20 }
  0x12   :  { %v45_v11 = vadd.f32 %v41_v8, %v40_v7  ;;  %s159_s21 = scalar_lea.vmem %s114_s20, 512  ;;  %p164_p6 = scmp.lt.s32.totalorder %s114_s20, %s114_s20 }
  0x13   :  { %43 = vadd.xlane.f32.xlu1 %v42_v9  ;;  %p160_p5 = scmp.ne.s32.totalorder %s114_s20, %s159_s21  ;;  %p165_p7 = scmp.lt.s32.totalorder %s159_s21, %s159_s21 }
  0x15   :  { %34 = vadd.xlane.f32.xlu0 %v33_v10  ;;  %p166_p8 = por %p165_p7, %p164_p6 }
  0x17   :  { %46 = vadd.xlane.f32.xlu1 %v45_v11  ;;  %p167_p9 = pnand %p166_p8, %p160_p5 }
  0x9a   :  { %v32_v13 = vpop.xlane.xlu0 %31 }
  0x9b   :  { %v36_v14 = vmul.f32 0.00390625, %v32_v13 }
  0x9c   :  { %v44_v15 = vpop.xlane.xlu1 %43 }
  0x9d   :  { %v50_v16 = vmul.f32 %v36_v14, %v36_v14  ;;  %v48_v17 = vmul.f32 0.00390625, %v44_v15 }
  0x9e   :  { %v35_v18 = vpop.xlane.xlu0 %34 }
  0x9f   :  { %v52_v19 = vsub.f32 %v48_v17, %v50_v16  ;;  %v37_v20 = vmul.f32 0.00390625, %v35_v18 }
  0xa0   :  { %v47_v21 = vpop.xlane.xlu1 %46 }
  0xa1   :  { %v54_v22 = vmax.f32 %v52_v19, 0.0  ;;  %v51_v23 = vmul.f32 %v37_v20, %v37_v20  ;;  %v49_v24 = vmul.f32 0.00390625, %v47_v21 }
  0xa3   :  { %v56_v25 = vadd.f32 1e-05, %v54_v22  ;;  %v53_v26 = vsub.f32 %v49_v24, %v51_v23 }
  0xa5   :  { %135 = vrsqrt.f32 %v56_v25  ;;  %v55_v27 = vmax.f32 %v53_v26, 0.0 }
  0xa7   :  { %v57_v28 = vadd.f32 1e-05, %v55_v27 }
  0xa9   :  { %137 = vrsqrt.f32 %v57_v28 }
  0xb2   :  { %v136_v31 = vpop.eup %135 }
  0xb3   :  { %v62_v32 = vmul.f32 %v136_v31, %v60_v30 }
  0xb5   :  { %v64_v34 = vmul.f32 %v62_v32, %v36_v14 }
  0xb6   :  { %v138_v35 = vpop.eup %137 }
  0xb7   :  { %68 = vrot.lane.b32.xlu0 %v64_v34, %s188_s19  ;;  %v63_v36 = vmul.f32 %v138_v35, %v61_v33 }
  0xb9   :  { %v65_v37 = vmul.f32 %v63_v36, %v37_v20 }
  0xbb   :  { %70 = vrot.lane.b32.xlu1 %v65_v37, %s188_s19 }
  0xbf   :  { %78 = vperm.xlu1 %132, %v62_v32  }
  0xc3   :  { %83 = vperm.xlu1 %132, %v63_v36  }
  0xc7   :  { %134 = vset.pattern.permute.xlu1 %v187_v29 }
 0x129   :  { %v69_v38 = vpop.permute.xlu0 %68 }
 0x12a   :  { %v74_v39 = vsub.f32 %v60_v30, %v69_v38 }
 0x12c   :  { %92 = vperm.xlu0 %133, %v74_v39  }
 0x12d   :  { %v71_v40 = vpop.permute.xlu1 %70 }
 0x12e   :  { %v75_v41 = vsub.f32 %v61_v33, %v71_v40 }
 0x130   :  { %97 = vperm.xlu1 %134, %v75_v41  }
 0x13a   :  { %v79_v42 = vpop.permute.xlu1 %78 }
 0x13b   :  { %v86_v43 = vmul.f32 %v79_v42, %v26_v0  ;;  %v87_v44 = vmul.f32 %v79_v42, %v27_v1 }
 0x13e   :  { %v84_v45 = vpop.permute.xlu1 %83 }
 0x13f   :  { %v88_v49 = vmul.f32 %v84_v45, %v211_v2  ;;  %v89_v50 = vmul.f32 %v84_v45, %v29_v6 }
 0x1a7   :  { %v93_v46 = vpop.permute.xlu0 %92 }
 0x1a8   :  { %v100_v47 = vadd.f32 %v93_v46, %v86_v43  ;;  %v101_v48 = vadd.f32 %v93_v46, %v87_v44 }
 0x1aa   :  { %104 = vst [vmem:[#allocation5] sm:$0xff] %v100_v47  ;;  %105 = vst [vmem:[#allocation5 + $0x8] sm:$0xff] %v101_v48 }
 0x1ab   :  { %v98_v51 = vpop.permute.xlu1 %97 }
 0x1ac   :  { %v102_v52 = vadd.f32 %v98_v51, %v88_v49  ;;  %v103_v53 = vadd.f32 %v98_v51, %v89_v50 }
 0x1ae   :  { %106 = vst [vmem:[#allocation5 + $0x10] sm:$0xff] %v102_v52  ;;  %107 = vst [vmem:[#allocation5 + $0x18] sm:$0xff] %v103_v53 }
 0x1af   :  { %170 = shalt.err (!%p167_p9)
}
 0x1b0   :  { %119 = dma.vmem_to_hbm [thread:$0]  %s114_s20, 512, %s231_s2, [#allocation4], %s184_s12, %s184_s12, %s185_s13  }
 0x1b1   :  { %181 = dma.done.wait [#allocation4], 512  }
 0x1b2   :  { %182 = vsyncadd [#allocation4], 4294966784 }
 0x1b3   :  { %123 = vsyncpa [#allocation3], 1 }
 0x1b4   :  { %124 = vsyncpa [#allocation4], 1 }

</bundles_post_ra>
